<compile_context>
chip_gen: v6e
topology: v6e:2x2x1
jax: 0.10.0
libtpu: 0.0.40
codegen_flags: <defaults>
</compile_context>

<pallas_src>
import math
import functools

import jax
import jax.numpy as jnp
from jax.experimental import pallas as pl
from jax.experimental.pallas import tpu as pltpu

# ---------------- problem sizes (small, synthetic) ----------------
B = 2            # batch
LQ = 8           # latent / query sequence length
LKV = 8          # context / key-value sequence length
LATENT_DIM = 32  # d_embed
CONTEXT_DIM = 24 # d_cross
HEADS = 4
D_HEAD = LATENT_DIM // HEADS
HIDDEN = 64      # decoder MLP hidden width
OUT_DIM = 32     # decoder MLP output width


def _round_up(x, m):
    return (x + m - 1) // m * m


def _fused_decoder_kernel(
    x_ref, w_ref, out_ref,
    *, batch, lq, lkv, heads, d_head, d_model, hidden, out_dim,
    r_proj, off_wf, off_w2, off_bf, off_b2,
):
    """Fused cross-attention + (folded) MLP decoder for the whole tiny batch."""
    d = d_model
    rows_q = batch * lq

    # ---- static ref-view slices of the single weight/bias slab (free) ----
    wproj = w_ref[0:r_proj, 0:3 * d]                    # block-diag [wq | wk|wv] + bias row
    wf = w_ref[off_wf:off_wf + d, 0:hidden]             # wo @ w1   (D, HIDDEN)
    w2 = w_ref[off_w2:off_w2 + hidden, 0:out_dim]       # (HIDDEN, OUT)
    bf = w_ref[off_bf:off_bf + 1, 0:hidden]             # bo @ w1 + b1
    b2 = w_ref[off_b2:off_b2 + 1, 0:out_dim]            # (1, OUT)

    # ---- ONE block-diagonal matmul = Q, K and V projections + biases ----
    # x rows 0:rows_q are z (cols 0:D), rows rows_q: are context (cols D:D+DC),
    # the ones-column picks up the bias row of wproj.
    y = jnp.dot(x_ref[...], wproj, preferred_element_type=jnp.float32)  # (B*LQ+B*LKV, 3D)

    # ---- head-major stacks, batch merged into the head axis: (B*H, L, dh) ----
    qh_l, kh_l, vh_l = [], [], []
    for b in range(batch):                 # static, tiny
        q0 = b * lq
        k0 = rows_q + b * lkv
        for h in range(heads):
            c0 = h * d_head
            qh_l.append(y[q0:q0 + lq, c0:c0 + d_head])
            kh_l.append(y[k0:k0 + lkv, d + c0:d + c0 + d_head])
            vh_l.append(y[k0:k0 + lkv, 2 * d + c0:2 * d + c0 + d_head])
    qh = jnp.stack(qh_l)                   # (B*H, LQ, dh)
    kh = jnp.stack(kh_l)                   # (B*H, LKV, dh)
    vh = jnp.stack(vh_l)                   # (B*H, LKV, dh)

    # ---- ONE scores einsum, ONE softmax chain, ONE p@v einsum ----
    scale = 1.0 / math.sqrt(d_head)
    s = jnp.einsum('nqd,nkd->nqk', qh, kh,
                   preferred_element_type=jnp.float32) * scale          # (B*H, LQ, LKV)
    s = s - jnp.max(s, axis=-1, keepdims=True)
    p = jnp.exp(s)
    p = p / jnp.sum(p, axis=-1, keepdims=True)   # exact divide (tolerance restored to 1e-4)
    o = jnp.einsum('nqk,nkd->nqd', p, vh,
                   preferred_element_type=jnp.float32)                  # (B*H, LQ, dh)

    # ---- output projection folded into MLP layer 1: sum_h o_h @ (wo@w1)[h] ----
    wf_n = jnp.stack([wf[h * d_head:(h + 1) * d_head, :] for h in range(heads)] * batch)
    c = jnp.einsum('nqd,nde->nqe', o, wf_n,
                   preferred_element_type=jnp.float32)                  # (B*H, LQ, HIDDEN)
    h1_pre = jnp.concatenate(
        [jnp.sum(c[b * heads:(b + 1) * heads], axis=0) for b in range(batch)],
        axis=0)                                                         # (B*LQ, HIDDEN)

    # ---- decoder backbone tail: GELU -> Linear ----
    # TODO(synk): decoder_backbone is an arbitrary nn.Module in the reference;
    # the Wo->W1 fold above is only valid because it is instantiated here as
    # Linear(32,64)->GELU->Linear(64,32).
    h1 = jax.nn.gelu(h1_pre + bf)
    yout = jnp.dot(h1, w2, preferred_element_type=jnp.float32) + b2
    out_ref[...] = yout.astype(out_ref.dtype)


def cross_attention_conditional_decoder(z, context, params):
    """Wrapper: single fused kernel invocation, 2 packed inputs, 1 output."""
    b, lq, d = z.shape
    _, lkv, dc = context.shape
    heads = HEADS
    d_head = d // heads
    hidden = params["w1"].shape[1]
    out_dim = params["w2"].shape[1]

    # ---- slab layout (rows; all section offsets are multiples of 8) ----
    r_proj = _round_up(d + dc + 1, 8)        # 64  : block-diag proj weight (+bias row)
    off_wf = r_proj                          # 64  : wo @ w1       (d rows)
    off_w2 = off_wf + d                      # 96  : w2            (hidden rows)
    off_bf = off_w2 + hidden                 # 160 : bo@w1 + b1    (8-row section)
    off_b2 = off_bf + 8                      # 168 : b2            (8-row section)
    slab_rows = off_b2 + 8                   # 176
    lanes = 128

    def lane_pad(a):
        return jnp.pad(a, ((0, 0), (0, lanes - a.shape[1])))

    # Exact static-param folds, done at full precision so they don't cost accuracy.
    with jax.default_matmul_precision("highest"):
        wf = params["wo"] @ params["w1"]                      # (D, HIDDEN)
        bf = params["bo"] @ params["w1"] + params["b1"]       # (1, HIDDEN)

    # Block-diagonal projection weight with the q/k/v biases folded in as a row.
    wproj = jnp.concatenate([
        jnp.concatenate([params["wq"], jnp.zeros((d, 2 * d), jnp.float32)], axis=1),
        jnp.concatenate([jnp.zeros((dc, d), jnp.float32), params["wk"], params["wv"]], axis=1),
        jnp.concatenate([params["bq"], params["bk"], params["bv"]], axis=1),
        jnp.zeros((r_proj - d - dc - 1, 3 * d), jnp.float32),
    ], axis=0)                                                # (r_proj, 3D)

    slab = jnp.concatenate([
        lane_pad(wproj),
        lane_pad(wf),
        lane_pad(params["w2"]),
        lane_pad(jnp.concatenate([bf, jnp.zeros((7, hidden), jnp.float32)], axis=0)),
        lane_pad(jnp.concatenate([params["b2"], jnp.zeros((7, out_dim), jnp.float32)], axis=0)),
    ], axis=0)                                                # (176, 128)
    assert slab.shape == (slab_rows, lanes), slab.shape

    # Activation slab: [[z2, 0, 1, 0], [0, ctx2, 1, 0]] so one matmul does Q and K|V.
    z2 = z.reshape(b * lq, d)
    ctx2 = context.reshape(b * lkv, dc)
    pad_w = r_proj - d - dc - 1
    x_top = jnp.concatenate([
        z2, jnp.zeros((b * lq, dc), jnp.float32),
        jnp.ones((b * lq, 1), jnp.float32), jnp.zeros((b * lq, pad_w), jnp.float32)], axis=1)
    x_bot = jnp.concatenate([
        jnp.zeros((b * lkv, d), jnp.float32), ctx2,
        jnp.ones((b * lkv, 1), jnp.float32), jnp.zeros((b * lkv, pad_w), jnp.float32)], axis=1)
    x = jnp.concatenate([x_top, x_bot], axis=0)               # (B*LQ + B*LKV, r_proj)

    kernel = functools.partial(
        _fused_decoder_kernel,
        batch=b, lq=lq, lkv=lkv, heads=heads, d_head=d_head, d_model=d,
        hidden=hidden, out_dim=out_dim,
        r_proj=r_proj, off_wf=off_wf, off_w2=off_w2, off_bf=off_bf, off_b2=off_b2,
    )

    def full(shape):
        # whole (untiled) array, same block every grid step
        return pl.BlockSpec(shape, lambda i: (0,) * len(shape))

    out2 = pl.pallas_call(
        kernel,
        out_shape=jax.ShapeDtypeStruct((b * lq, out_dim), z.dtype),
        grid_spec=pltpu.PrefetchScalarGridSpec(
            num_scalar_prefetch=0,
            grid=(1,),                       # single step: whole problem fits trivially in VMEM
            in_specs=[full(x.shape), full(slab.shape)],
            out_specs=full((b * lq, out_dim)),
        ),
        compiler_params=pltpu.CompilerParams(
            dimension_semantics=("arbitrary",),
        ),
    )(x, slab)

    return out2.reshape(b, lq, out_dim)


def _reference(z, context, params):
    """Pure-JAX reference for validation (full-precision matmuls)."""
    with jax.default_matmul_precision("highest"):
        def lin(x, w, bias):
            return x @ w + bias

        q = lin(z, params["wq"], params["bq"])        # (B, LQ, D)
        k = lin(context, params["wk"], params["bk"])  # (B, LKV, D)
        v = lin(context, params["wv"], params["bv"])

        def split(x):  # (B, L, D) -> (B, H, L, dh)
            bsz, l, _ = x.shape
            return x.reshape(bsz, l, HEADS, D_HEAD).transpose(0, 2, 1, 3)

        qh, kh, vh = split(q), split(k), split(v)
        s = jnp.einsum("bhqd,bhkd->bhqk", qh, kh) / math.sqrt(D_HEAD)
        p = jax.nn.softmax(s, axis=-1)
        o = jnp.einsum("bhqk,bhkd->bhqd", p, vh)
        o = o.transpose(0, 2, 1, 3).reshape(z.shape)
        attended = lin(o, params["wo"], params["bo"])

        h1 = jax.nn.gelu(lin(attended, params["w1"], params["b1"]))
        return lin(h1, params["w2"], params["b2"])


def _make_params(key):
    """Deterministic synthetic parameters (shapes implied by the module's __init__)."""
    ks = jax.random.split(key, 12)

    def w(k, shape, fan_in):
        return jax.random.normal(k, shape, jnp.float32) / math.sqrt(fan_in)

    def bias(k, width, scale=0.05):
        return scale * jax.random.normal(k, (1, width), jnp.float32)

    return {
        # CrossAttention(n_heads=4, d_embed=LATENT_DIM, d_cross=CONTEXT_DIM)
        "wq": w(ks[0], (LATENT_DIM, LATENT_DIM), LATENT_DIM),
        "bq": bias(ks[6], LATENT_DIM),
        "wk": w(ks[1], (CONTEXT_DIM, LATENT_DIM), CONTEXT_DIM),
        "bk": bias(ks[7], LATENT_DIM),
        "wv": w(ks[2], (CONTEXT_DIM, LATENT_DIM), CONTEXT_DIM),
        "bv": bias(ks[8], LATENT_DIM),
        "wo": w(ks[3], (LATENT_DIM, LATENT_DIM), LATENT_DIM),
        "bo": bias(ks[9], LATENT_DIM),
        # decoder backbone (synthetic 2-layer MLP)
        "w1": w(ks[4], (LATENT_DIM, HIDDEN), LATENT_DIM),
        "b1": bias(ks[10], HIDDEN),
        "w2": w(ks[5], (HIDDEN, OUT_DIM), HIDDEN),
        "b2": bias(ks[11], OUT_DIM),
    }


if __name__ == "__main__":
    key = jax.random.PRNGKey(0)
    k_z, k_ctx, k_p = jax.random.split(key, 3)

    z = jax.random.normal(k_z, (B, LQ, LATENT_DIM), jnp.float32)
    context = jax.random.normal(k_ctx, (B, LKV, CONTEXT_DIM), jnp.float32)
    params = _make_params(k_p)

    out = cross_attention_conditional_decoder(z, context, params)
    out = jax.block_until_ready(out)

    ref = _reference(z, context, params)
    assert out.shape == (B, LQ, OUT_DIM), out.shape
    err = float(jnp.max(jnp.abs(out - ref)))
    # Exact divide in softmax + full-precision reference => 1e-4 tolerance restored.
    assert jnp.allclose(out, ref, atol=1e-4, rtol=1e-4), err
    print("KERNEL_OK")
</pallas_src>

<mosaic_0001>
module attributes {stable_mosaic.version = 11 : i64} {
  func.func @_fused_decoder_kernel(%arg0: i32, %arg1: memref<32x64xf32, #tpu.memory_space<vmem>>, %arg2: memref<176x128xf32, #tpu.memory_space<vmem>>, %arg3: memref<16x32xf32, #tpu.memory_space<vmem>>) attributes {dimension_semantics = [#tpu.dimension_semantics<arbitrary>], iteration_bounds = array<i64: 1>, scalar_prefetch = 0 : i64, scratch_operands = 0 : i64, tpu.core_type = #tpu.core_type<tc>, window_params = [{pipeline_mode = #tpu.pipeline_mode<synchronous>, transform_indices = @transform_0, window_bounds = array<i64: 32, 64>}, {pipeline_mode = #tpu.pipeline_mode<synchronous>, transform_indices = @transform_1, window_bounds = array<i64: 176, 128>}, {pipeline_mode = #tpu.pipeline_mode<synchronous>, transform_indices = @transform_2, window_bounds = array<i64: 16, 32>}]} {
    %c0 = arith.constant 0 : index
    %c0_0 = arith.constant 0 : index
    %0 = vector.load %arg2[%c0, %c0_0] : memref<176x128xf32, #tpu.memory_space<vmem>>, vector<64x96xf32>
    %c64 = arith.constant 64 : index
    %c0_1 = arith.constant 0 : index
    %1 = vector.load %arg2[%c64, %c0_1] : memref<176x128xf32, #tpu.memory_space<vmem>>, vector<32x64xf32>
    %c96 = arith.constant 96 : index
    %c0_2 = arith.constant 0 : index
    %2 = vector.load %arg2[%c96, %c0_2] : memref<176x128xf32, #tpu.memory_space<vmem>>, vector<64x32xf32>
    %c160 = arith.constant 160 : index
    %c0_3 = arith.constant 0 : index
    %3 = vector.load %arg2[%c160, %c0_3] : memref<176x128xf32, #tpu.memory_space<vmem>>, vector<1x64xf32>
    %c168 = arith.constant 168 : index
    %c0_4 = arith.constant 0 : index
    %4 = vector.load %arg2[%c168, %c0_4] : memref<176x128xf32, #tpu.memory_space<vmem>>, vector<1x32xf32>
    %c0_5 = arith.constant 0 : index
    %c0_6 = arith.constant 0 : index
    %5 = vector.load %arg1[%c0_5, %c0_6] : memref<32x64xf32, #tpu.memory_space<vmem>>, vector<32x64xf32>
    %cst = arith.constant dense<0.000000e+00> : vector<32x96xf32>
    %6 = tpu.matmul %5, %0, %cst {dimension_numbers = #tpu.dot_dimension_numbers<[1], [0], [0], [1], [0, 0, 1, 1], [], []>} : vector<32x64xf32>, vector<64x96xf32>, vector<32x96xf32> -> vector<32x96xf32>
    %7 = vector.extract_strided_slice %6 {offsets = [0, 0], sizes = [8, 8], strides = [1, 1]} : vector<32x96xf32> to vector<8x8xf32>
    %8 = vector.extract_strided_slice %6 {offsets = [16, 32], sizes = [8, 8], strides = [1, 1]} : vector<32x96xf32> to vector<8x8xf32>
    %9 = vector.extract_strided_slice %6 {offsets = [16, 64], sizes = [8, 8], strides = [1, 1]} : vector<32x96xf32> to vector<8x8xf32>
    %10 = vector.extract_strided_slice %6 {offsets = [0, 8], sizes = [8, 8], strides = [1, 1]} : vector<32x96xf32> to vector<8x8xf32>
    %11 = vector.extract_strided_slice %6 {offsets = [16, 40], sizes = [8, 8], strides = [1, 1]} : vector<32x96xf32> to vector<8x8xf32>
    %12 = vector.extract_strided_slice %6 {offsets = [16, 72], sizes = [8, 8], strides = [1, 1]} : vector<32x96xf32> to vector<8x8xf32>
    %13 = vector.extract_strided_slice %6 {offsets = [0, 16], sizes = [8, 8], strides = [1, 1]} : vector<32x96xf32> to vector<8x8xf32>
    %14 = vector.extract_strided_slice %6 {offsets = [16, 48], sizes = [8, 8], strides = [1, 1]} : vector<32x96xf32> to vector<8x8xf32>
    %15 = vector.extract_strided_slice %6 {offsets = [16, 80], sizes = [8, 8], strides = [1, 1]} : vector<32x96xf32> to vector<8x8xf32>
    %16 = vector.extract_strided_slice %6 {offsets = [0, 24], sizes = [8, 8], strides = [1, 1]} : vector<32x96xf32> to vector<8x8xf32>
    %17 = vector.extract_strided_slice %6 {offsets = [16, 56], sizes = [8, 8], strides = [1, 1]} : vector<32x96xf32> to vector<8x8xf32>
    %18 = vector.extract_strided_slice %6 {offsets = [16, 88], sizes = [8, 8], strides = [1, 1]} : vector<32x96xf32> to vector<8x8xf32>
    %19 = vector.extract_strided_slice %6 {offsets = [8, 0], sizes = [8, 8], strides = [1, 1]} : vector<32x96xf32> to vector<8x8xf32>
    %20 = vector.extract_strided_slice %6 {offsets = [24, 32], sizes = [8, 8], strides = [1, 1]} : vector<32x96xf32> to vector<8x8xf32>
    %21 = vector.extract_strided_slice %6 {offsets = [24, 64], sizes = [8, 8], strides = [1, 1]} : vector<32x96xf32> to vector<8x8xf32>
    %22 = vector.extract_strided_slice %6 {offsets = [8, 8], sizes = [8, 8], strides = [1, 1]} : vector<32x96xf32> to vector<8x8xf32>
    %23 = vector.extract_strided_slice %6 {offsets = [24, 40], sizes = [8, 8], strides = [1, 1]} : vector<32x96xf32> to vector<8x8xf32>
    %24 = vector.extract_strided_slice %6 {offsets = [24, 72], sizes = [8, 8], strides = [1, 1]} : vector<32x96xf32> to vector<8x8xf32>
    %25 = vector.extract_strided_slice %6 {offsets = [8, 16], sizes = [8, 8], strides = [1, 1]} : vector<32x96xf32> to vector<8x8xf32>
    %26 = vector.extract_strided_slice %6 {offsets = [24, 48], sizes = [8, 8], strides = [1, 1]} : vector<32x96xf32> to vector<8x8xf32>
    %27 = vector.extract_strided_slice %6 {offsets = [24, 80], sizes = [8, 8], strides = [1, 1]} : vector<32x96xf32> to vector<8x8xf32>
    %28 = vector.extract_strided_slice %6 {offsets = [8, 24], sizes = [8, 8], strides = [1, 1]} : vector<32x96xf32> to vector<8x8xf32>
    %29 = vector.extract_strided_slice %6 {offsets = [24, 56], sizes = [8, 8], strides = [1, 1]} : vector<32x96xf32> to vector<8x8xf32>
    %30 = vector.extract_strided_slice %6 {offsets = [24, 88], sizes = [8, 8], strides = [1, 1]} : vector<32x96xf32> to vector<8x8xf32>
    %31 = vector.shape_cast %7 : vector<8x8xf32> to vector<1x8x8xf32>
    %32 = vector.shape_cast %10 : vector<8x8xf32> to vector<1x8x8xf32>
    %33 = vector.shape_cast %13 : vector<8x8xf32> to vector<1x8x8xf32>
    %34 = vector.shape_cast %16 : vector<8x8xf32> to vector<1x8x8xf32>
    %35 = vector.shape_cast %19 : vector<8x8xf32> to vector<1x8x8xf32>
    %36 = vector.shape_cast %22 : vector<8x8xf32> to vector<1x8x8xf32>
    %37 = vector.shape_cast %25 : vector<8x8xf32> to vector<1x8x8xf32>
    %38 = vector.shape_cast %28 : vector<8x8xf32> to vector<1x8x8xf32>
    %39 = tpu.concatenate %31, %32, %33, %34, %35, %36, %37, %38 in 0 : vector<1x8x8xf32>, vector<1x8x8xf32>, vector<1x8x8xf32>, vector<1x8x8xf32>, vector<1x8x8xf32>, vector<1x8x8xf32>, vector<1x8x8xf32>, vector<1x8x8xf32> -> vector<8x8x8xf32>
    %40 = vector.shape_cast %8 : vector<8x8xf32> to vector<1x8x8xf32>
    %41 = vector.shape_cast %11 : vector<8x8xf32> to vector<1x8x8xf32>
    %42 = vector.shape_cast %14 : vector<8x8xf32> to vector<1x8x8xf32>
    %43 = vector.shape_cast %17 : vector<8x8xf32> to vector<1x8x8xf32>
    %44 = vector.shape_cast %20 : vector<8x8xf32> to vector<1x8x8xf32>
    %45 = vector.shape_cast %23 : vector<8x8xf32> to vector<1x8x8xf32>
    %46 = vector.shape_cast %26 : vector<8x8xf32> to vector<1x8x8xf32>
    %47 = vector.shape_cast %29 : vector<8x8xf32> to vector<1x8x8xf32>
    %48 = tpu.concatenate %40, %41, %42, %43, %44, %45, %46, %47 in 0 : vector<1x8x8xf32>, vector<1x8x8xf32>, vector<1x8x8xf32>, vector<1x8x8xf32>, vector<1x8x8xf32>, vector<1x8x8xf32>, vector<1x8x8xf32>, vector<1x8x8xf32> -> vector<8x8x8xf32>
    %49 = vector.shape_cast %9 : vector<8x8xf32> to vector<1x8x8xf32>
    %50 = vector.shape_cast %12 : vector<8x8xf32> to vector<1x8x8xf32>
    %51 = vector.shape_cast %15 : vector<8x8xf32> to vector<1x8x8xf32>
    %52 = vector.shape_cast %18 : vector<8x8xf32> to vector<1x8x8xf32>
    %53 = vector.shape_cast %21 : vector<8x8xf32> to vector<1x8x8xf32>
    %54 = vector.shape_cast %24 : vector<8x8xf32> to vector<1x8x8xf32>
    %55 = vector.shape_cast %27 : vector<8x8xf32> to vector<1x8x8xf32>
    %56 = vector.shape_cast %30 : vector<8x8xf32> to vector<1x8x8xf32>
    %57 = tpu.concatenate %49, %50, %51, %52, %53, %54, %55, %56 in 0 : vector<1x8x8xf32>, vector<1x8x8xf32>, vector<1x8x8xf32>, vector<1x8x8xf32>, vector<1x8x8xf32>, vector<1x8x8xf32>, vector<1x8x8xf32>, vector<1x8x8xf32> -> vector<8x8x8xf32>
    "tpu.trace_start"() <{level = 10 : i32, message = "nqd,nkd->nqk"}> : () -> ()
    %cst_7 = arith.constant dense<0.000000e+00> : vector<8x8x8xf32>
    %58 = tpu.matmul %39, %48, %cst_7 {dimension_numbers = #tpu.dot_dimension_numbers<[2], [2], [1], [1], [0, 0, 0, 1, 1, 1], [0], [0]>} : vector<8x8x8xf32>, vector<8x8x8xf32>, vector<8x8x8xf32> -> vector<8x8x8xf32>
    "tpu.trace_stop"() : () -> ()
    %cst_8 = arith.constant 0.353553385 : f32
    %59 = vector.broadcast %cst_8 : f32 to vector<8x8x8xf32>
    %60 = arith.mulf %58, %59 : vector<8x8x8xf32>
    %cst_9 = arith.constant dense<0xFF800000> : vector<8x8xf32>
    %61 = vector.multi_reduction <maximumf>, %60, %cst_9 [2] : vector<8x8x8xf32> to vector<8x8xf32>
    %62 = vector.shape_cast %61 : vector<8x8xf32> to vector<8x8x1xf32>
    %63 = vector.broadcast %62 : vector<8x8x1xf32> to vector<8x8x8xf32>
    %64 = arith.subf %60, %63 : vector<8x8x8xf32>
    %65 = math.exp %64 : vector<8x8x8xf32>
    %cst_10 = arith.constant dense<0.000000e+00> : vector<8x8xf32>
    %66 = vector.multi_reduction <add>, %65, %cst_10 [2] : vector<8x8x8xf32> to vector<8x8xf32>
    %67 = vector.shape_cast %66 : vector<8x8xf32> to vector<8x8x1xf32>
    %68 = vector.broadcast %67 : vector<8x8x1xf32> to vector<8x8x8xf32>
    %69 = arith.divf %65, %68 : vector<8x8x8xf32>
    "tpu.trace_start"() <{level = 10 : i32, message = "nqk,nkd->nqd"}> : () -> ()
    %cst_11 = arith.constant dense<0.000000e+00> : vector<8x8x8xf32>
    %70 = tpu.matmul %69, %57, %cst_11 {dimension_numbers = #tpu.dot_dimension_numbers<[2], [1], [1], [2], [0, 0, 0, 1, 1, 2], [0], [0]>} : vector<8x8x8xf32>, vector<8x8x8xf32>, vector<8x8x8xf32> -> vector<8x8x8xf32>
    "tpu.trace_stop"() : () -> ()
    %71 = vector.extract_strided_slice %1 {offsets = [0, 0], sizes = [8, 64], strides = [1, 1]} : vector<32x64xf32> to vector<8x64xf32>
    %72 = vector.extract_strided_slice %1 {offsets = [8, 0], sizes = [8, 64], strides = [1, 1]} : vector<32x64xf32> to vector<8x64xf32>
    %73 = vector.extract_strided_slice %1 {offsets = [16, 0], sizes = [8, 64], strides = [1, 1]} : vector<32x64xf32> to vector<8x64xf32>
    %74 = vector.extract_strided_slice %1 {offsets = [24, 0], sizes = [8, 64], strides = [1, 1]} : vector<32x64xf32> to vector<8x64xf32>
    %75 = vector.shape_cast %71 : vector<8x64xf32> to vector<1x8x64xf32>
    %76 = vector.shape_cast %72 : vector<8x64xf32> to vector<1x8x64xf32>
    %77 = vector.shape_cast %73 : vector<8x64xf32> to vector<1x8x64xf32>
    %78 = vector.shape_cast %74 : vector<8x64xf32> to vector<1x8x64xf32>
    %79 = vector.shape_cast %71 : vector<8x64xf32> to vector<1x8x64xf32>
    %80 = vector.shape_cast %72 : vector<8x64xf32> to vector<1x8x64xf32>
    %81 = vector.shape_cast %73 : vector<8x64xf32> to vector<1x8x64xf32>
    %82 = vector.shape_cast %74 : vector<8x64xf32> to vector<1x8x64xf32>
    %83 = tpu.concatenate %75, %76, %77, %78, %79, %80, %81, %82 in 0 : vector<1x8x64xf32>, vector<1x8x64xf32>, vector<1x8x64xf32>, vector<1x8x64xf32>, vector<1x8x64xf32>, vector<1x8x64xf32>, vector<1x8x64xf32>, vector<1x8x64xf32> -> vector<8x8x64xf32>
    "tpu.trace_start"() <{level = 10 : i32, message = "nqd,nde->nqe"}> : () -> ()
    %cst_12 = arith.constant dense<0.000000e+00> : vector<8x8x64xf32>
    %84 = tpu.matmul %70, %83, %cst_12 {dimension_numbers = #tpu.dot_dimension_numbers<[2], [1], [1], [2], [0, 0, 0, 1, 1, 2], [0], [0]>} : vector<8x8x8xf32>, vector<8x8x64xf32>, vector<8x8x64xf32> -> vector<8x8x64xf32>
    "tpu.trace_stop"() : () -> ()
    %85 = vector.extract_strided_slice %84 {offsets = [0, 0, 0], sizes = [4, 8, 64], strides = [1, 1, 1]} : vector<8x8x64xf32> to vector<4x8x64xf32>
    %cst_13 = arith.constant dense<0.000000e+00> : vector<8x64xf32>
    %86 = vector.multi_reduction <add>, %85, %cst_13 [0] : vector<4x8x64xf32> to vector<8x64xf32>
    %87 = vector.extract_strided_slice %84 {offsets = [4, 0, 0], sizes = [4, 8, 64], strides = [1, 1, 1]} : vector<8x8x64xf32> to vector<4x8x64xf32>
    %cst_14 = arith.constant dense<0.000000e+00> : vector<8x64xf32>
    %88 = vector.multi_reduction <add>, %87, %cst_14 [0] : vector<4x8x64xf32> to vector<8x64xf32>
    %89 = tpu.concatenate %86, %88 in 0 : vector<8x64xf32>, vector<8x64xf32> -> vector<16x64xf32>
    %90 = vector.broadcast %3 : vector<1x64xf32> to vector<16x64xf32>
    %91 = arith.addf %89, %90 : vector<16x64xf32>
    %92 = arith.mulf %91, %91 : vector<16x64xf32>
    %93 = arith.mulf %91, %92 : vector<16x64xf32>
    %cst_15 = arith.constant 4.471500e-02 : f32
    %94 = vector.broadcast %cst_15 : f32 to vector<16x64xf32>
    %95 = arith.mulf %94, %93 : vector<16x64xf32>
    %96 = arith.addf %91, %95 : vector<16x64xf32>
    %cst_16 = arith.constant 0.797884583 : f32
    %97 = vector.broadcast %cst_16 : f32 to vector<16x64xf32>
    %98 = arith.mulf %97, %96 : vector<16x64xf32>
    %99 = math.tanh %98 : vector<16x64xf32>
    %cst_17 = arith.constant 1.000000e+00 : f32
    %100 = vector.broadcast %cst_17 : f32 to vector<16x64xf32>
    %101 = arith.addf %100, %99 : vector<16x64xf32>
    %cst_18 = arith.constant 5.000000e-01 : f32
    %102 = vector.broadcast %cst_18 : f32 to vector<16x64xf32>
    %103 = arith.mulf %102, %101 : vector<16x64xf32>
    %104 = arith.mulf %91, %103 : vector<16x64xf32>
    %cst_19 = arith.constant dense<0.000000e+00> : vector<16x32xf32>
    %105 = tpu.matmul %104, %2, %cst_19 {dimension_numbers = #tpu.dot_dimension_numbers<[1], [0], [0], [1], [0, 0, 1, 1], [], []>} : vector<16x64xf32>, vector<64x32xf32>, vector<16x32xf32> -> vector<16x32xf32>
    %106 = vector.broadcast %4 : vector<1x32xf32> to vector<16x32xf32>
    %107 = arith.addf %105, %106 : vector<16x32xf32>
    %c0_20 = arith.constant 0 : index
    %c0_21 = arith.constant 0 : index
    %108 = vector.load %arg3[%c0_20, %c0_21] : memref<16x32xf32, #tpu.memory_space<vmem>>, vector<16x32xf32>
    tpu.vector_store %arg3[%c0_20, %c0_21], %107 {strides = array<i32>} : memref<16x32xf32, #tpu.memory_space<vmem>>, vector<16x32xf32>,
    return
  }
  func.func @transform_0(%arg0: i32) -> (i32, i32) {
    %c0_i32 = arith.constant 0 : i32
    %c0_i32_0 = arith.constant 0 : i32
    %c0_i32_1 = arith.constant 0 : i32
    return %c0_i32, %c0_i32_0 : i32, i32
  }
  func.func @transform_1(%arg0: i32) -> (i32, i32) {
    %c0_i32 = arith.constant 0 : i32
    %c0_i32_0 = arith.constant 0 : i32
    %c0_i32_1 = arith.constant 0 : i32
    return %c0_i32, %c0_i32_0 : i32, i32
  }
  func.func @transform_2(%arg0: i32) -> (i32, i32) {
    %c0_i32 = arith.constant 0 : i32
    %c0_i32_0 = arith.constant 0 : i32
    %c0_i32_1 = arith.constant 0 : i32
    return %c0_i32, %c0_i32_0 : i32, i32
  }
}

</mosaic_0001>

<bundles_post_ra>
// kernel: tpu_custom_call.1
= control target key start
LH: loop header
LB: loop body
LE: loop exit
PB: predicated region body
PF: predicated region fallthrough
CT: control target
= control target key end

     0   :  { %7 = vsyncpa [#allocation3], 0  ;;  %s2869_s0 = inlined_call_operand.hbm [shape: f32[32,64], index: 0, kind: input, shape index: {}]   ;;  %s2870_s1 = inlined_call_operand.hbm [shape: f32[176,128], index: 1, kind: input, shape index: {}]   ;;  %s2871_s2 = inlined_call_operand.hbm [shape: f32[16,32], index: 2, kind: output, shape index: {}]  }
   0x1   :  { %8 = vsyncpa [#allocation6], 0 }
   0x2   :  { %9 = vsyncpa [#allocation4], 0  ;;  %s2618_s9 = smov [#allocation2]  }
   0x3   :  { %s15_s10 = sshll.u32 %s2618_s9, 4  ;;  %s16_s10 = int_to_ptr.vmem [resolvable:$true] %s15_s10 }
   0x4   :  { %s2560_s11 = scalar_lea.vmem %s16_s10, 512  ;;  %p2565_p1 = scmp.lt.s32.totalorder %s16_s10, %s16_s10 }
   0x5   :  { %p2561_p0 = scmp.ne.s32.totalorder %s16_s10, %s2560_s11  ;;  %p2566_p2 = scmp.lt.s32.totalorder %s2560_s11, %s2560_s11 }
   0x7   :  { %p2567_p3 = por %p2566_p2, %p2565_p1 }
   0x9   :  { %p2568_p4 = pnand %p2567_p3, %p2561_p0 }
   0xb   :  { %2571 = shalt.err (!%p2568_p4)
}
   0xc   :  { %s2619_s12 = smov 128   ;;  %s2620_s13 = smov 8  }
   0xd   :  { %21 = dma.hbm_to_vmem [thread:$0]  %s2869_s0, 512, %s16_s10, [#allocation3], %s2619_s12, %s2619_s12, %s2620_s13  }
   0xe   :  { %s2621_s16 = smov [#allocation5]  }
   0xf   :  { %s27_s17 = sshll.u32 %s2621_s16, 4  ;;  %s28_s17 = int_to_ptr.vmem [resolvable:$true] %s27_s17 }
  0x10   :  { %s2580_s18 = scalar_lea.vmem %s28_s17, 2816  ;;  %p2585_p6 = scmp.lt.s32.totalorder %s28_s17, %s28_s17 }
  0x11   :  { %p2581_p5 = scmp.ne.s32.totalorder %s28_s17, %s2580_s18  ;;  %p2586_p7 = scmp.lt.s32.totalorder %s2580_s18, %s2580_s18 }
  0x13   :  { %p2587_p8 = por %p2586_p7, %p2585_p6 }
  0x15   :  { %p2588_p9 = pnand %p2587_p8, %p2581_p5 }
  0x17   :  { %2591 = shalt.err (!%p2588_p9)
}
  0x18   :  { %33 = dma.hbm_to_vmem [thread:$0]  %s2870_s1, 2816, %s28_s17, [#allocation6], %s2619_s12, %s2619_s12, %s2620_s13  }
  0x19   :  { %2612 = dma.done.wait [#allocation3], 512  }
  0x1a   :  { %2613 = vsyncadd [#allocation3], 4294966784 }
  0x1b   :  { %2614 = dma.done.wait [#allocation6], 2816  }
  0x1c   :  { %2615 = vsyncadd [#allocation6], 4294964480  ;;  %v47_v0 = vld [vmem:[#allocation5 + $0x38] sm:$0xff]  ;;  %v46_v1 = vld [vmem:[#allocation5 + $0x30] sm:$0xff]  ;;  %vm66_vm0 = vcmask 523264   ;;  %v2622_v14 = vmov 0.0  }
  0x1d   :  { %2343 = vmatprep.subr.mxu0 %v47_v0  ;;  %v45_v2 = vld [vmem:[#allocation5 + $0x28] sm:$0xff]  ;;  %v62_v3 = vld [vmem:[#allocation2] sm:$0xff]  ;;  %v43_v5 = vld [vmem:[#allocation5 + $0x18] sm:$0xff]  ;;  %2370 = vmatprep.subr.mxu1 %v2622_v14  ;;  %s2623_s0 = smov 104   ;;  %s2624_s1 = smov 120   ;;  %vm2625_vm1 = vmmov 0  }
  0x1e   :  { %2344 = vmatpush3.msra.mxu0 %v47_v0  ;;  %2359 = vmatprep.mubr.msk.f32.mxu0 %vm66_vm0, %v62_v3  ;;  %v44_v4 = vld [vmem:[#allocation5 + $0x20] sm:$0xff]  ;;  %v42_v6 = vld [vmem:[#allocation5 + $0x10] sm:$0xff]  ;;  %v41_v7 = vld [vmem:[#allocation5 + $0x8] sm:$0xff]  ;;  %s2626_s21 = smov 112   ;;  %s2627_s22 = smov 96   ;;  %vm194_vm2 = vcmask 64512  }
  0x1f   :  { %2345 = vmatprep.subr.mxu0 %v46_v1  ;;  %v40_v8 = vld [vmem:[#allocation5] sm:$0xff]  ;;  %v63_v9 = vld [vmem:[#allocation2 + $0x8] sm:$0xff]  ;;  %v64_v10 = vld [vmem:[#allocation2 + $0x10] sm:$0xff]  ;;  %2372 = vmatprep.mubr.msk.f32.mxu1 %vm2625_vm1, %v2622_v14  ;;  %s2628_s23 = smov 64   ;;  %vm2212_vm3 = vcmask 261120   ;;  %s2629_s24 = smov [#allocation7]  }
  0x20   :  { %2346 = vmatpush3.msra.mxu0 %v46_v1  ;;  %v65_v11 = vld [vmem:[#allocation2 + $0x18] sm:$0xff]  ;;  %s2220_s25 = sshll.u32 %s2629_s24, 4  ;;  %s2221_s25 = int_to_ptr.vmem [resolvable:$true] %s2220_s25 }
  0x21   :  { %2347 = vmatprep.subr.mxu0 %v45_v2  ;;  %s2592_s26 = scalar_lea.vmem %s2221_s25, 256  ;;  %p2597_p11 = scmp.lt.s32.totalorder %s2221_s25, %s2221_s25 }
  0x22   :  { %2348 = vmatpush3.msra.mxu0 %v45_v2  ;;  %p2593_p10 = scmp.ne.s32.totalorder %s2221_s25, %s2592_s26  ;;  %p2598_p12 = scmp.lt.s32.totalorder %s2592_s26, %s2592_s26 }
  0x23   :  { %2349 = vmatprep.subr.mxu0 %v44_v4 }
  0x24   :  { %2350 = vmatpush3.msra.mxu0 %v44_v4  ;;  %p2599_p13 = por %p2598_p12, %p2597_p11 }
  0x25   :  { %2351 = vmatprep.subr.mxu0 %v43_v5 }
  0x26   :  { %2352 = vmatpush3.msra.mxu0 %v43_v5  ;;  %p2600_p0 = pnand %p2599_p13, %p2593_p10 }
  0x27   :  { %2353 = vmatprep.subr.mxu0 %v42_v6 }
  0x28   :  { %2354 = vmatpush3.msra.mxu0 %v42_v6 }
  0x29   :  { %2355 = vmatprep.subr.mxu0 %v41_v7 }
  0x2a   :  { %2356 = vmatpush3.msra.mxu0 %v41_v7 }
  0x2b   :  { %2357 = vmatprep.subr.mxu0 %v40_v8 }
  0x2c   :  { %2358 = vmatpush3.msra.mxu0 %v40_v8 }
  0x2d   :  { %2360 = vmatmul.mubr.msk.f32.vlgmr.msra.gmra.mxu0 %vm66_vm0, %v63_v9  ;;  %2365 = vmatprep.subr.mxu0 %v2622_v14 }
  0x2e   :  { %2362 = vmatprep.mubr.msk.f32.mxu0 %vm66_vm0, %v64_v10 }
  0x31   :  { %2363 = vmatmul.mubr.msk.f32.gmra.mxu0 %vm66_vm0, %v65_v11 }
  0x32   :  { %2367 = vmatprep.mubr.msk.f32.mxu0 %vm2625_vm1, %v2622_v14 }
  0xed   :  { %v2661_v12 = vpop.f32.mrf.mxu0 }
  0xef   :  { %v145_v13 = vpop.f32.mrf.mxu0 }
  0xf1   :  { %v2665_v15 = vpop.f32.mrf.mxu0 }
  0xf3   :  { %v2667_v16 = vpop.f32.mrf.mxu0 }
  0xf4   :  { %183 = vrot.lane.b32.xlu1 %v2667_v16, %s2623_s0  ;;  %179 = vrot.lane.b32.xlu0 %v2667_v16, %s2624_s1 }
  0xf8   :  { %186 = vrot.lane.b32.xlu1 %v2665_v15, %s2624_s1  ;;  %181 = vrot.lane.b32.xlu0 %v2667_v16, %s2626_s21 }
  0xfc   :  { %190 = vrot.lane.b32.xlu1 %v2665_v15, %s2623_s0  ;;  %188 = vrot.lane.b32.xlu0 %v2665_v15, %s2626_s21 }
 0x100   :  { %165 = vrot.lane.b32.xlu1 %v145_v13, %s2624_s1  ;;  %192 = vrot.lane.b32.xlu0 %v2667_v16, %s2627_s22 }
 0x166   :  { %v2682_v17 = vpop.permute.xlu0 %179  ;;  %v2688_v19 = vpop.permute.xlu1 %183 }
 0x167   :  { %269 = vrot.lane.b32.xlu0 %v2682_v17, %s2627_s22 }
 0x16a   :  { %v2685_v18 = vpop.permute.xlu0 %181  ;;  %v2694_v21 = vpop.permute.xlu1 %186 }
 0x16b   :  { %167 = vrot.lane.b32.xlu0 %v145_v13, %s2626_s21  ;;  %345 = vrot.lane.b32.xlu1 %v2685_v18, %s2627_s22 }
 0x16e   :  { %v2690_v20 = vpop.permute.xlu0 %188  ;;  %v2705_v23 = vpop.permute.xlu1 %190 }
 0x16f   :  { %169 = vrot.lane.b32.xlu0 %v145_v13, %s2623_s0  ;;  %421 = vrot.lane.b32.xlu1 %v2688_v19, %s2627_s22 }
 0x172   :  { %v193_v22 = vpop.permute.xlu0 %192  ;;  %v166_v24 = vpop.permute.xlu1 %165 }
 0x173   :  { %573 = vrot.lane.b32.xlu0 %v2694_v21, %s2627_s22  ;;  %497 = vrot.lane.b32.xlu1 %v2665_v15, %s2627_s22 }
 0x174   :  { %2366 = vmatpush3.xpose.msk.msra.mxu0 %vm194_vm2, %v193_v22 }
 0x175   :  { %2390 = vmatprep.subr.mxu0 %v2622_v14 }
 0x177   :  { %2368 = vmatmul.mubr.msk.f32.vlgmr.msra.gmra.mxu0 %vm194_vm2, %v145_v13  ;;  %172 = vrot.lane.b32.xlu0 %v2661_v12, %s2624_s1 }
 0x178   :  { %649 = vrot.lane.b32.xlu1 %v2690_v20, %s2627_s22  ;;  %2392 = vmatprep.mubr.msk.f32.mxu0 %vm2625_vm1, %v2622_v14 }
 0x17b   :  { %174 = vrot.lane.b32.xlu0 %v2661_v12, %s2626_s21 }
 0x17c   :  { %725 = vrot.lane.b32.xlu1 %v2705_v23, %s2627_s22 }
 0x180   :  { %176 = vrot.lane.b32.xlu1 %v2661_v12, %s2623_s0 }
 0x1d9   :  { %v270_v25 = vpop.permute.xlu0 %269 }
 0x1da   :  { %2371 = vmatpush3.xpose.msk.msra.mxu1 %vm194_vm2, %v270_v25 }
 0x1db   :  { %2375 = vmatprep.subr.mxu1 %v2622_v14 }
 0x1dd   :  { %v346_v26 = vpop.permute.xlu1 %345  ;;  %2373 = vmatmul.mubr.msk.f32.vlgmr.msra.gmra.mxu1 %vm194_vm2, %v166_v24  ;;  %v168_v27 = vpop.permute.xlu0 %167 }
 0x1de   :  { %2376 = vmatpush3.xpose.msk.msra.mxu1 %vm194_vm2, %v346_v26  ;;  %2377 = vmatprep.mubr.msk.f32.mxu1 %vm2625_vm1, %v2622_v14 }
 0x1df   :  { %2380 = vmatprep.subr.mxu1 %v2622_v14 }
 0x1e1   :  { %v422_v28 = vpop.permute.xlu1 %421  ;;  %2378 = vmatmul.mubr.msk.f32.vlgmr.msra.gmra.mxu1 %vm194_vm2, %v168_v27  ;;  %v170_v29 = vpop.permute.xlu0 %169 }
 0x1e2   :  { %2381 = vmatpush3.xpose.msk.msra.mxu1 %vm194_vm2, %v422_v28  ;;  %2382 = vmatprep.mubr.msk.f32.mxu1 %vm2625_vm1, %v2622_v14 }
 0x1e3   :  { %2385 = vmatprep.subr.mxu1 %v2622_v14 }
 0x1e5   :  { %v498_v30 = vpop.permute.xlu1 %497  ;;  %2383 = vmatmul.mubr.msk.f32.vlgmr.msra.gmra.mxu1 %vm194_vm2, %v170_v29  ;;  %v574_v31 = vpop.permute.xlu0 %573 }
 0x1e6   :  { %2386 = vmatpush3.xpose.msk.msra.mxu1 %vm194_vm2, %v498_v30  ;;  %2391 = vmatpush3.xpose.msk.msra.mxu0 %vm194_vm2, %v574_v31 }
 0x1e7   :  { %2387 = vmatprep.mubr.msk.f32.mxu1 %vm2625_vm1, %v2622_v14  ;;  %2395 = vmatprep.subr.mxu1 %v2622_v14 }
 0x1e8   :  { %2400 = vmatprep.subr.mxu0 %v2622_v14 }
 0x1e9   :  { %2388 = vmatmul.mubr.msk.f32.vlgmr.msra.gmra.mxu1 %vm194_vm2, %v2661_v12  ;;  %v173_v32 = vpop.permute.xlu0 %172 }
 0x1ea   :  { %v650_v33 = vpop.permute.xlu1 %649  ;;  %2393 = vmatmul.mubr.msk.f32.vlgmr.msra.gmra.mxu0 %vm194_vm2, %v173_v32  ;;  %2397 = vmatprep.mubr.msk.f32.mxu1 %vm2625_vm1, %v2622_v14 }
 0x1eb   :  { %2396 = vmatpush3.xpose.msk.msra.mxu1 %vm194_vm2, %v650_v33  ;;  %2402 = vmatprep.mubr.msk.f32.mxu0 %vm2625_vm1, %v2622_v14 }
 0x1ec   :  { %2405 = vmatprep.subr.mxu1 %v2622_v14 }
 0x1ed   :  { %v175_v34 = vpop.permute.xlu0 %174 }
 0x1ee   :  { %v726_v35 = vpop.permute.xlu1 %725  ;;  %2398 = vmatmul.mubr.msk.f32.vlgmr.msra.gmra.mxu1 %vm194_vm2, %v175_v34 }
 0x1ef   :  { %2401 = vmatpush3.xpose.msk.msra.mxu0 %vm194_vm2, %v726_v35  ;;  %2407 = vmatprep.mubr.msk.f32.mxu1 %vm2625_vm1, %v2622_v14 }
 0x1f0   :  { %2410 = vmatprep.subr.mxu0 %v2622_v14 }
 0x1f2   :  { %v177_v36 = vpop.permute.xlu1 %176 }
 0x1f3   :  { %2403 = vmatmul.mubr.msk.f32.vlgmr.msra.gmra.mxu0 %vm194_vm2, %v177_v36 }
 0x1f4   :  { %2412 = vmatprep.mubr.msk.f32.mxu0 %vm2625_vm1, %v2622_v14 }
 0x237   :  { %v265_v37 = vpop.f32.mrf.mxu0 }
 0x238   :  { %v801_v38 = vmul.f32 0.35355338, %v265_v37 }
 0x239   :  { %v2369_v39 = vpop.f32.mrf.mxu0 }
 0x23a   :  { %v809_v40 = vsel %vm194_vm2, %v801_v38, -inf }
 0x23b   :  { %810 = vmax.xlane.f32.xlu0 %v809_v40 }
 0x29d   :  { %v341_v41 = vpop.f32.mrf.mxu1 }
 0x29e   :  { %v802_v42 = vmul.f32 0.35355338, %v341_v41 }
 0x29f   :  { %v2374_v43 = vpop.f32.mrf.mxu1 }
 0x2a0   :  { %v812_v44 = vsel %vm194_vm2, %v802_v42, -inf }
 0x2a1   :  { %813 = vmax.xlane.f32.xlu1 %v812_v44  ;;  %v417_v45 = vpop.f32.mrf.mxu1 }
 0x2a2   :  { %v803_v46 = vmul.f32 0.35355338, %v417_v45 }
 0x2a3   :  { %v2379_v47 = vpop.f32.mrf.mxu1 }
 0x2a4   :  { %v815_v48 = vsel %vm194_vm2, %v803_v46, -inf }
 0x2a5   :  { %816 = vmax.xlane.f32.xlu0 %v815_v48  ;;  %v493_v49 = vpop.f32.mrf.mxu1 }
 0x2a6   :  { %v804_v50 = vmul.f32 0.35355338, %v493_v49 }
 0x2a7   :  { %v2384_v51 = vpop.f32.mrf.mxu1 }
 0x2a8   :  { %v818_v52 = vsel %vm194_vm2, %v804_v50, -inf }
 0x2a9   :  { %819 = vmax.xlane.f32.xlu0 %v818_v52  ;;  %v569_v53 = vpop.f32.mrf.mxu1 }
 0x2aa   :  { %v645_v54 = vpop.f32.mrf.mxu0  ;;  %v805_v1 = vmul.f32 0.35355338, %v569_v53 }
 0x2ab   :  { %v806_v55 = vmul.f32 0.35355338, %v645_v54  ;;  %v2389_v56 = vpop.f32.mrf.mxu1 }
 0x2ac   :  { %v2394_v57 = vpop.f32.mrf.mxu0  ;;  %v821_v3 = vsel %vm194_vm2, %v805_v1, -inf }
 0x2ad   :  { %v824_v58 = vsel %vm194_vm2, %v806_v55, -inf }
 0x2ae   :  { %825 = vmax.xlane.f32.xlu0 %v824_v58  ;;  %v721_v59 = vpop.f32.mrf.mxu1 }
 0x2af   :  { %v807_v2 = vmul.f32 0.35355338, %v721_v59 }
 0x2b0   :  { %v2399_v60 = vpop.f32.mrf.mxu1 }
 0x2b1   :  { %v827_v4 = vsel %vm194_vm2, %v807_v2, -inf }
 0x2b2   :  { %897 = vrot.lane.b32.xlu1 %v2667_v16, %s2628_s23 }
 0x2b3   :  { %v797_v61 = vpop.f32.mrf.mxu0 }
 0x2b4   :  { %v808_v62 = vmul.f32 0.35355338, %v797_v61 }
 0x2b5   :  { %v2404_v63 = vpop.f32.mrf.mxu0 }
 0x2b6   :  { %1049 = vrot.lane.b32.xlu1 %v2685_v18, %s2628_s23  ;;  %v830_v0 = vsel %vm194_vm2, %v808_v62, -inf }
 0x2b7   :  { %831 = vmax.xlane.f32.xlu0 %v830_v0 }
 0x2c4   :  { %v811_v5 = vpop.xlane.xlu0 %810 }
 0x2c5   :  { %v833_v6 = vsub.f32 %v801_v38, %v811_v5 }
 0x2c7   :  { %v841_v7 = vmul.f32 1.442695, %v833_v6 }
 0x2c9   :  { %2516 = vpow2.f32 %v841_v7 }
 0x2cd   :  { %973 = vrot.lane.b32.xlu0 %v2682_v17, %s2628_s23 }
 0x2d6   :  { %v2763_v8 = vpop.eup %2516 }
 0x2d7   :  { %v857_v9 = vsel %vm194_vm2, %v2763_v8, 0.0 }
 0x2da   :  { %822 = vmax.xlane.f32.xlu1 %v821_v3 }
 0x2de   :  { %828 = vmax.xlane.f32.xlu1 %v827_v4 }
 0x2ef   :  { %1125 = vrot.lane.b32.xlu1 %v2688_v19, %s2628_s23 }
 0x313   :  { %858 = vadd.xlane.f32.xlu1 %v857_v9 }
 0x32a   :  { %v814_v10 = vpop.xlane.xlu1 %813 }
 0x32b   :  { %v834_v18 = vsub.f32 %v802_v42, %v814_v10 }
 0x32d   :  { %v843_v24 = vmul.f32 1.442695, %v834_v18  ;;  %v50_v18 = vld [vmem:[#allocation5 + $0x50] sm:$0xff] }
 0x32e   :  { %v898_v11 = vpop.permute.xlu1 %897  ;;  %v817_v12 = vpop.xlane.xlu0 %816 }
 0x32f   :  { %v835_v13 = vsub.f32 %v803_v46, %v817_v12  ;;  %2406 = vmatpush3.msra.mxu1 %v898_v11 }
 0x330   :  { %2415 = vmatprep.subr.mxu1 %v2622_v14 }
 0x331   :  { %v845_v16 = vmul.f32 1.442695, %v835_v13 }
 0x332   :  { %v820_v17 = vpop.xlane.xlu0 %819  ;;  %v1050_v42 = vpop.permute.xlu1 %1049 }
 0x333   :  { %2518 = vpow2.f32 %v845_v16  ;;  %v836_v26 = vsub.f32 %v804_v50, %v820_v17  ;;  %v48_v16 = vld [vmem:[#allocation5 + $0x40] sm:$0xff]  ;;  %v49_v17 = vld [vmem:[#allocation5 + $0x48] sm:$0xff] }
 0x335   :  { %v847_v31 = vmul.f32 1.442695, %v836_v26  ;;  %v51_v26 = vld [vmem:[#allocation5 + $0x58] sm:$0xff] }
 0x337   :  { %v826_v19 = vpop.xlane.xlu0 %825 }
 0x338   :  { %v838_v22 = vsub.f32 %v806_v55, %v826_v19 }
 0x33a   :  { %v851_v25 = vmul.f32 1.442695, %v838_v22 }
 0x33c   :  { %2520 = vpow2.f32 %v851_v25 }
 0x33d   :  { %2522 = vpow2.f32 %v843_v24 }
 0x340   :  { %v2519_v27 = vpop.eup %2518  ;;  %v832_v28 = vpop.xlane.xlu0 %831 }
 0x341   :  { %v840_v29 = vsub.f32 %v808_v62, %v832_v28  ;;  %v863_v30 = vsel %vm194_vm2, %v2519_v27, 0.0 }
 0x342   :  { %864 = vadd.xlane.f32.xlu1 %v863_v30 }
 0x343   :  { %v855_v32 = vmul.f32 1.442695, %v840_v29 }
 0x344   :  { %v974_v33 = vpop.permute.xlu0 %973 }
 0x345   :  { %2524 = vpow2.f32 %v855_v32  ;;  %2411 = vmatpush3.msra.mxu0 %v974_v33 }
 0x346   :  { %2420 = vmatprep.subr.mxu0 %v2622_v14  ;;  %2526 = vpow2.f32 %v847_v31 }
 0x349   :  { %v2770_v34 = vpop.eup %2520 }
 0x34a   :  { %v872_v35 = vsel %vm194_vm2, %v2770_v34, 0.0  ;;  %v2523_v36 = vpop.eup %2522 }
 0x34b   :  { %873 = vadd.xlane.f32.xlu0 %v872_v35  ;;  %v860_v37 = vsel %vm194_vm2, %v2523_v36, 0.0 }
 0x34f   :  { %861 = vadd.xlane.f32.xlu0 %v860_v37 }
 0x352   :  { %v2775_v38 = vpop.eup %2524 }
 0x353   :  { %1277 = vrot.lane.b32.xlu1 %v2694_v21, %s2628_s23  ;;  %v878_v39 = vsel %vm194_vm2, %v2775_v38, 0.0  ;;  %v2527_v40 = vpop.eup %2526 }
 0x354   :  { %879 = vadd.xlane.f32.xlu0 %v878_v39  ;;  %v866_v41 = vsel %vm194_vm2, %v2527_v40, 0.0  ;;  %v59_v39 = vld [vmem:[#allocation5 + $0x98] sm:$0xff] }
 0x358   :  { %867 = vadd.xlane.f32.xlu0 %v866_v41  ;;  %v57_v41 = vld [vmem:[#allocation5 + $0x88] sm:$0xff] }
 0x363   :  { %v823_v43 = vpop.xlane.xlu1 %822 }
 0x364   :  { %v837_v44 = vsub.f32 %v805_v1, %v823_v43 }
 0x366   :  { %v849_v45 = vmul.f32 1.442695, %v837_v44  ;;  %v55_v44 = vld [vmem:[#allocation5 + $0x78] sm:$0xff] }
 0x367   :  { %v829_v46 = vpop.xlane.xlu1 %828 }
 0x368   :  { %2528 = vpow2.f32 %v849_v45  ;;  %v839_v47 = vsub.f32 %v807_v2, %v829_v46  ;;  %v53_v46 = vld [vmem:[#allocation5 + $0x68] sm:$0xff] }
 0x36a   :  { %v853_v48 = vmul.f32 1.442695, %v839_v47  ;;  %v52_v47 = vld [vmem:[#allocation5 + $0x60] sm:$0xff] }
 0x36b   :  { %v1126_v52 = vpop.permute.xlu1 %1125 }
 0x36c   :  { %2530 = vpow2.f32 %v853_v48 }
 0x36e   :  { %1201 = vrot.lane.b32.xlu0 %v2665_v15, %s2628_s23 }
 0x372   :  { %1353 = vrot.lane.b32.xlu0 %v2690_v20, %s2628_s23 }
 0x375   :  { %v2529_v21 = vpop.eup %2528 }
 0x376   :  { %v869_v49 = vsel %vm194_vm2, %v2529_v21, 0.0 }
 0x377   :  { %870 = vadd.xlane.f32.xlu1 %v869_v49 }
 0x379   :  { %v2787_v50 = vpop.eup %2530 }
 0x37a   :  { %v875_v51 = vsel %vm194_vm2, %v2787_v50, 0.0 }
 0x37b   :  { %876 = vadd.xlane.f32.xlu1 %v875_v51 }
 0x38c   :  { %1429 = vrot.lane.b32.xlu1 %v2705_v23, %s2628_s23 }
 0x39c   :  { %v859_v53 = vpop.xlane.xlu1 %858 }
 0x39d   :  { %2532 = vrcp.f32 %v859_v53 }
 0x3aa   :  { %v2533_v15 = vpop.eup %2532 }
 0x3ab   :  { %v882_v54 = vmul.f32 %v2533_v15, %v2763_v8 }
 0x3ad   :  { %2408 = vmatmul.mubr.msk.f32.vlgmr.msra.gmra.mxu1 %vm194_vm2, %v882_v54 }
 0x3ae   :  { %2416 = vmatpush3.msra.mxu1 %v1050_v42  ;;  %2417 = vmatprep.mubr.msk.f32.mxu1 %vm2625_vm1, %v2622_v14  ;;  %v56_v42 = vld [vmem:[#allocation5 + $0x80] sm:$0xff] }
 0x3af   :  { %2425 = vmatprep.subr.mxu1 %v2622_v14 }
 0x3cb   :  { %v865_v20 = vpop.xlane.xlu1 %864 }
 0x3cc   :  { %2534 = vrcp.f32 %v865_v20 }
 0x3cf   :  { %v1278_v2 = vpop.permute.xlu1 %1277 }
 0x3d4   :  { %v874_v55 = vpop.xlane.xlu0 %873 }
 0x3d8   :  { %v862_v56 = vpop.xlane.xlu0 %861 }
 0x3d9   :  { %v2535_v57 = vpop.eup %2534  ;;  %2536 = vrcp.f32 %v862_v56 }
 0x3da   :  { %v886_v23 = vmul.f32 %v2535_v57, %v2519_v27 }
 0x3dc   :  { %2418 = vmatmul.mubr.msk.f32.vlgmr.msra.gmra.mxu1 %vm194_vm2, %v886_v23 }
 0x3dd   :  { %v880_v58 = vpop.xlane.xlu0 %879  ;;  %2427 = vmatprep.mubr.msk.f32.mxu1 %vm2625_vm1, %v2622_v14 }
 0x3e1   :  { %v868_v59 = vpop.xlane.xlu0 %867 }
 0x3e2   :  { %2538 = vrcp.f32 %v868_v59 }
 0x3e3   :  { %2540 = vrcp.f32 %v874_v55  ;;  %v2269_v55 = vld [vmem:[#allocation5 + $0xa0] ss:$0 sm:$0xff] }
 0x3e4   :  { %2542 = vrcp.f32 %v880_v58 }
 0x3e5   :  { %v1202_v60 = vpop.permute.xlu0 %1201 }
 0x3e6   :  { %v2537_v61 = vpop.eup %2536  ;;  %2426 = vmatpush3.msra.mxu1 %v1202_v60 }
 0x3e7   :  { %v884_v62 = vmul.f32 %v2537_v61, %v2523_v36  ;;  %2435 = vmatprep.subr.mxu1 %v2622_v14 }
 0x3e9   :  { %2413 = vmatmul.mubr.msk.f32.vlgmr.msra.gmra.mxu0 %vm194_vm2, %v884_v62  ;;  %v1354_v11 = vpop.permute.xlu0 %1353 }
 0x3ea   :  { %2421 = vmatpush3.msra.mxu0 %v1126_v52  ;;  %2422 = vmatprep.mubr.msk.f32.mxu0 %vm2625_vm1, %v2622_v14 }
 0x3eb   :  { %2430 = vmatprep.subr.mxu0 %v2622_v14 }
 0x3ef   :  { %v2539_v63 = vpop.eup %2538 }
 0x3f0   :  { %v888_v0 = vmul.f32 %v2539_v63, %v2527_v40  ;;  %v2541_v1 = vpop.eup %2540  ;;  %v58_v40 = vld [vmem:[#allocation5 + $0x90] sm:$0xff] }
 0x3f1   :  { %v892_v3 = vmul.f32 %v2541_v1, %v2770_v34  ;;  %v2543_v6 = vpop.eup %2542 }
 0x3f2   :  { %2423 = vmatmul.mubr.msk.f32.vlgmr.msra.gmra.mxu0 %vm194_vm2, %v888_v0  ;;  %v896_v8 = vmul.f32 %v2543_v6, %v2775_v38 }
 0x3f3   :  { %2431 = vmatpush3.msra.mxu0 %v1278_v2  ;;  %2432 = vmatprep.mubr.msk.f32.mxu0 %vm2625_vm1, %v2622_v14 }
 0x3f4   :  { %2440 = vmatprep.subr.mxu0 %v2622_v14 }
 0x3f6   :  { %2433 = vmatmul.mubr.msk.f32.vlgmr.msra.gmra.mxu0 %vm194_vm2, %v892_v3 }
 0x3f7   :  { %2442 = vmatprep.mubr.msk.f32.mxu0 %vm2625_vm1, %v2622_v14 }
 0x400   :  { %v871_v4 = vpop.xlane.xlu1 %870 }
 0x401   :  { %2544 = vrcp.f32 %v871_v4 }
 0x404   :  { %v877_v5 = vpop.xlane.xlu1 %876 }
 0x405   :  { %2546 = vrcp.f32 %v877_v5 }
 0x408   :  { %v1430_v7 = vpop.permute.xlu1 %1429 }
 0x409   :  { %2441 = vmatpush3.msra.mxu0 %v1430_v7 }
 0x40a   :  { %2443 = vmatmul.mubr.msk.f32.vlgmr.msra.gmra.mxu0 %vm194_vm2, %v896_v8  ;;  %2450 = vmatprep.subr.mxu0 %v2622_v14 }
 0x40b   :  { %2452 = vmatprep.mubr.msk.f32.mxu0 %vm2625_vm1, %v2622_v14  ;;  %2451 = vmatpush3.msra.mxu0 %v49_v17 }
 0x40c   :  { %2460 = vmatprep.subr.mxu0 %v2622_v14 }
 0x40e   :  { %v2545_v9 = vpop.eup %2544 }
 0x40f   :  { %v890_v10 = vmul.f32 %v2545_v9, %v2529_v21 }
 0x411   :  { %2428 = vmatmul.mubr.msk.f32.vlgmr.msra.gmra.mxu1 %vm194_vm2, %v890_v10 }
 0x412   :  { %v2547_v12 = vpop.eup %2546  ;;  %2436 = vmatpush3.msra.mxu1 %v1354_v11  ;;  %2437 = vmatprep.mubr.msk.f32.mxu1 %vm2625_vm1, %v2622_v14 }
 0x413   :  { %v894_v13 = vmul.f32 %v2547_v12, %v2787_v50  ;;  %2445 = vmatprep.subr.mxu1 %v2622_v14 }
 0x415   :  { %2438 = vmatmul.mubr.msk.f32.vlgmr.msra.gmra.mxu1 %vm194_vm2, %v894_v13 }
 0x416   :  { %2446 = vmatpush3.msra.mxu1 %v48_v16  ;;  %2447 = vmatprep.mubr.msk.f32.mxu1 %vm2625_vm1, %v2622_v14 }
 0x417   :  { %2455 = vmatprep.subr.mxu1 %v2622_v14 }
 0x46d   :  { %v969_v19 = vpop.f32.mrf.mxu1 }
 0x46e   :  { %2448 = vmatmul.mubr.msk.f32.vlgmr.msra.gmra.mxu1 %vm194_vm2, %v969_v19 }
 0x46f   :  { %v2409_v22 = vpop.f32.mrf.mxu1  ;;  %2456 = vmatpush3.msra.mxu1 %v50_v18  ;;  %2457 = vmatprep.mubr.msk.f32.mxu1 %vm2625_vm1, %v2622_v14 }
 0x470   :  { %2465 = vmatprep.subr.mxu1 %v2622_v14 }
 0x49c   :  { %v1121_v24 = vpop.f32.mrf.mxu1 }
 0x49d   :  { %2458 = vmatmul.mubr.msk.f32.vlgmr.msra.gmra.mxu1 %vm194_vm2, %v1121_v24 }
 0x49e   :  { %v2419_v25 = vpop.f32.mrf.mxu1  ;;  %2466 = vmatpush3.msra.mxu1 %v48_v16  ;;  %2467 = vmatprep.mubr.msk.f32.mxu1 %vm2625_vm1, %v2622_v14 }
 0x49f   :  { %2475 = vmatprep.subr.mxu1 %v2622_v14 }
 0x4a9   :  { %v1045_v27 = vpop.f32.mrf.mxu0 }
 0x4aa   :  { %2453 = vmatmul.mubr.msk.f32.vlgmr.msra.gmra.mxu0 %vm194_vm2, %v1045_v27 }
 0x4ab   :  { %v2414_v28 = vpop.f32.mrf.mxu0  ;;  %2461 = vmatpush3.msra.mxu0 %v51_v26  ;;  %2462 = vmatprep.mubr.msk.f32.mxu0 %vm2625_vm1, %v2622_v14 }
 0x4ac   :  { %2470 = vmatprep.subr.mxu0 %v2622_v14 }
 0x4b2   :  { %v1197_v29 = vpop.f32.mrf.mxu0 }
 0x4b3   :  { %2463 = vmatmul.mubr.msk.f32.vlgmr.msra.gmra.mxu0 %vm194_vm2, %v1197_v29 }
 0x4b4   :  { %v2424_v30 = vpop.f32.mrf.mxu0  ;;  %2471 = vmatpush3.msra.mxu0 %v49_v17  ;;  %2472 = vmatprep.mubr.msk.f32.mxu0 %vm2625_vm1, %v2622_v14 }
 0x4b5   :  { %2480 = vmatprep.subr.mxu0 %v2622_v14 }
 0x4b6   :  { %v1349_v31 = vpop.f32.mrf.mxu0 }
 0x4b7   :  { %2473 = vmatmul.mubr.msk.f32.vlgmr.msra.gmra.mxu0 %vm194_vm2, %v1349_v31 }
 0x4b8   :  { %v2434_v32 = vpop.f32.mrf.mxu0  ;;  %2481 = vmatpush3.msra.mxu0 %v51_v26  ;;  %2482 = vmatprep.mubr.msk.f32.mxu0 %vm2625_vm1, %v2622_v14 }
 0x4ca   :  { %v1501_v33 = vpop.f32.mrf.mxu0 }
 0x4cb   :  { %2483 = vmatmul.mubr.msk.f32.vlgmr.msra.gmra.mxu0 %vm194_vm2, %v1501_v33 }
 0x4cc   :  { %v2444_v34 = vpop.f32.mrf.mxu0 }
 0x4cd   :  { %v2270_v34 = vld [vmem:[#allocation5 + $0xa8] ss:$0 sm:$0xff] }
 0x4d1   :  { %v1273_v35 = vpop.f32.mrf.mxu1 }
 0x4d2   :  { %2468 = vmatmul.mubr.msk.f32.vlgmr.msra.gmra.mxu1 %vm194_vm2, %v1273_v35 }
 0x4d3   :  { %v2429_v36 = vpop.f32.mrf.mxu1  ;;  %2476 = vmatpush3.msra.mxu1 %v50_v18  ;;  %2477 = vmatprep.mubr.msk.f32.mxu1 %vm2625_vm1, %v2622_v14  ;;  %v54_v14 = vld [vmem:[#allocation5 + $0x70] sm:$0xff] }
 0x4d4   :  { %2485 = vmatprep.subr.mxu1 %v59_v39 }
 0x4d5   :  { %v1425_v37 = vpop.f32.mrf.mxu1 }
 0x4d6   :  { %2478 = vmatmul.mubr.msk.f32.vlgmr.msra.gmra.mxu1 %vm194_vm2, %v1425_v37 }
 0x4d7   :  { %v2439_v38 = vpop.f32.mrf.mxu1  ;;  %2486 = vmatpush3.msra.mxu1 %v59_v39 }
 0x4d8   :  { %2487 = vmatprep.subr.mxu1 %v58_v40 }
 0x4d9   :  { %2488 = vmatpush3.msra.mxu1 %v58_v40 }
 0x4da   :  { %2489 = vmatprep.subr.mxu1 %v57_v41 }
 0x4db   :  { %2490 = vmatpush3.msra.mxu1 %v57_v41 }
 0x4dc   :  { %2491 = vmatprep.subr.mxu1 %v56_v42 }
 0x4dd   :  { %2492 = vmatpush3.msra.mxu1 %v56_v42 }
 0x4de   :  { %2493 = vmatprep.subr.mxu1 %v55_v44 }
 0x4df   :  { %2494 = vmatpush3.msra.mxu1 %v55_v44 }
 0x4e0   :  { %2495 = vmatprep.subr.mxu1 %v54_v14 }
 0x4e1   :  { %2496 = vmatpush3.msra.mxu1 %v54_v14 }
 0x4e2   :  { %2497 = vmatprep.subr.mxu1 %v53_v46 }
 0x4e3   :  { %2498 = vmatpush3.msra.mxu1 %v53_v46 }
 0x4e4   :  { %2499 = vmatprep.subr.mxu1 %v52_v47 }
 0x4e5   :  { %2500 = vmatpush3.msra.mxu1 %v52_v47 }
 0x52e   :  { %v1574_v43 = vpop.f32.mrf.mxu1 }
 0x52f   :  { %v2089_v52 = vsel %vm66_vm0, %v1574_v43, 0.0 }
 0x530   :  { %v2449_v45 = vpop.f32.mrf.mxu1 }
 0x55d   :  { %v1720_v48 = vpop.f32.mrf.mxu1 }
 0x55e   :  { %v2092_v15 = vsel %vm66_vm0, %v1720_v48, 0.0 }
 0x55f   :  { %v2459_v21 = vpop.f32.mrf.mxu1 }
 0x56a   :  { %v1647_v49 = vpop.f32.mrf.mxu0 }
 0x56b   :  { %v2090_v50 = vsel %vm66_vm0, %v1647_v49, 0.0 }
 0x56c   :  { %v2454_v51 = vpop.f32.mrf.mxu0  ;;  %v2091_v53 = vadd.f32 %v2090_v50, %v2089_v52 }
 0x56e   :  { %v2093_v20 = vadd.f32 %v2092_v15, %v2091_v53 }
 0x573   :  { %v1793_v54 = vpop.f32.mrf.mxu0 }
 0x574   :  { %v2094_v56 = vsel %vm66_vm0, %v1793_v54, 0.0 }
 0x575   :  { %v2095_v57 = vadd.f32 %v2094_v56, %v2093_v20  ;;  %v2464_v23 = vpop.f32.mrf.mxu0 }
 0x577   :  { %v2107_v58 = vadd.f32 %v2269_v55, %v2095_v57  ;;  %v1939_v59 = vpop.f32.mrf.mxu0 }
 0x578   :  { %v2097_v10 = vsel %vm66_vm0, %v1939_v59, 0.0 }
 0x579   :  { %v2109_v60 = vmul.f32 %v2107_v58, %v2107_v58  ;;  %v2474_v61 = vpop.f32.mrf.mxu0 }
 0x57b   :  { %v2111_v62 = vmul.f32 %v2109_v60, %v2107_v58 }
 0x57d   :  { %v2113_v63 = vmul.f32 0.044715, %v2111_v62 }
 0x57f   :  { %v2115_v0 = vadd.f32 %v2113_v63, %v2107_v58 }
 0x581   :  { %v2117_v1 = vmul.f32 0.7978846, %v2115_v0 }
 0x583   :  { %2548 = vtanh.f32 %v2117_v1 }
 0x58b   :  { %v2085_v2 = vpop.f32.mrf.mxu0 }
 0x58c   :  { %v2101_v19 = vsel %vm66_vm0, %v2085_v2, 0.0 }
 0x58d   :  { %v2484_v3 = vpop.f32.mrf.mxu0 }
 0x590   :  { %v2549_v4 = vpop.eup %2548 }
 0x591   :  { %v2121_v5 = vadd.f32 1.0, %v2549_v4 }
 0x592   :  { %v1866_v6 = vpop.f32.mrf.mxu1 }
 0x593   :  { %v2096_v7 = vsel %vm66_vm0, %v1866_v6, 0.0  ;;  %v2123_v8 = vmul.f32 0.5, %v2121_v5 }
 0x594   :  { %v2469_v9 = vpop.f32.mrf.mxu1  ;;  %v2098_v12 = vadd.f32 %v2097_v10, %v2096_v7 }
 0x595   :  { %v2125_v11 = vmul.f32 %v2123_v8, %v2107_v58 }
 0x596   :  { %v2012_v13 = vpop.f32.mrf.mxu1 }
 0x597   :  { %v2099_v16 = vsel %vm66_vm0, %v2012_v13, 0.0  ;;  %2501 = vmatprep.mubr.msk.f32.mxu1 %vm66_vm0, %v2125_v11 }
 0x598   :  { %v2100_v17 = vadd.f32 %v2099_v16, %v2098_v12  ;;  %v2479_v18 = vpop.f32.mrf.mxu1 }
 0x59a   :  { %v2102_v22 = vadd.f32 %v2101_v19, %v2100_v17 }
 0x59c   :  { %v2108_v24 = vadd.f32 %v2269_v55, %v2102_v22 }
 0x59e   :  { %v2110_v25 = vmul.f32 %v2108_v24, %v2108_v24 }
 0x5a0   :  { %v2112_v26 = vmul.f32 %v2110_v25, %v2108_v24 }
 0x5a2   :  { %v2114_v27 = vmul.f32 0.044715, %v2112_v26 }
 0x5a4   :  { %v2116_v28 = vadd.f32 %v2114_v27, %v2108_v24 }
 0x5a6   :  { %v2118_v29 = vmul.f32 0.7978846, %v2116_v28 }
 0x5a8   :  { %2550 = vtanh.f32 %v2118_v29 }
 0x5b5   :  { %v2551_v30 = vpop.eup %2550 }
 0x5b6   :  { %v2122_v31 = vadd.f32 1.0, %v2551_v30 }
 0x5b8   :  { %v2124_v32 = vmul.f32 0.5, %v2122_v31 }
 0x5ba   :  { %v2126_v33 = vmul.f32 %v2124_v32, %v2108_v24 }
 0x5bc   :  { %2502 = vmatmul.mubr.msk.f32.vlgmr.msra.gmra.mxu1 %vm66_vm0, %v2126_v33 }
 0x67c   :  { %v2503_v35 = vpop.f32.mrf.mxu1 }
 0x67d   :  { %v2209_v36 = vadd.f32 %v2503_v35, %v2270_v34 }
 0x67e   :  { %v2203_v37 = vpop.f32.mrf.mxu1 }
 0x67f   :  { %v2204_v38 = vadd.f32 %v2270_v34, %v2203_v37  ;;  %2214 = vst.msk [vmem:[#allocation7 + $0x8] sm:$0xff] %vm2212_vm3, %v2209_v36 }
 0x681   :  { %2213 = vst.msk [vmem:[#allocation7] sm:$0xff] %vm2212_vm3, %v2204_v38 }
 0x682   :  { %2603 = shalt.err (!%p2600_p0)
}
 0x683   :  { %2226 = dma.vmem_to_hbm [thread:$0]  %s2221_s25, 256, %s2871_s2, [#allocation4], %s2619_s12, %s2619_s12, %s2620_s13  }
 0x684   :  { %2616 = dma.done.wait [#allocation4], 256  }
 0x685   :  { %2617 = vsyncadd [#allocation4], 4294967040 }
 0x686   :  { %2230 = vsyncpa [#allocation3], 1 }
 0x687   :  { %2231 = vsyncpa [#allocation6], 1 }
 0x688   :  { %2232 = vsyncpa [#allocation4], 1 }

</bundles_post_ra>
